<compile_context>
chip_gen: v6e
topology: v6e:2x2x1
jax: 0.10.0
libtpu: 0.0.40
codegen_flags: <defaults>
</compile_context>

<pallas_src>
import math

import jax
import jax.numpy as jnp
from jax.experimental import pallas as pl
from jax.experimental.pallas import tpu as pltpu

LANE = 128      # TPU lane width: hidden dims padded to this for lane-dense MXU operands
SUBLANE = 16    # bf16 sublane packing: batch tile is a multiple of this


def _round_up(x, m):
    return ((x + m - 1) // m) * m


def dqn_kernel(x_ref, w1_ref, b1_ref, w2_ref, b2_ref, w3_ref, b3_ref, out_ref):
    """One batch tile of the 3-layer MLP, fully fused in VMEM.

    x: (TB, in) f32 (cast to bf16 in-kernel); w1/w2: bf16 (in_pad, 128);
    w3: bf16 (128, n_actions); biases f32. MXU matmuls accumulate in f32;
    bias add + ReLU stay in f32; activations recast to bf16 before the next matmul.
    Every row of the output depends only on the same row of the input, so garbage
    rows in a ragged last tile never contaminate valid rows.
    """
    x = x_ref[...].astype(jnp.bfloat16)   # VPU cast, hidden under the DMA

    # fc1 + ReLU
    h1 = jnp.dot(x, w1_ref[...], preferred_element_type=jnp.float32) + b1_ref[...]
    h1 = jnp.maximum(h1, 0.0).astype(jnp.bfloat16)

    # fc2 + ReLU
    h2 = jnp.dot(h1, w2_ref[...], preferred_element_type=jnp.float32) + b2_ref[...]
    h2 = jnp.maximum(h2, 0.0).astype(jnp.bfloat16)

    # fc3 (no activation — Q-values), narrow f32 output (n_actions columns).
    out_ref[...] = (
        jnp.dot(h2, w3_ref[...], preferred_element_type=jnp.float32) + b3_ref[...]
    )


def dqn_forward(state, params, *, block_batch=1024):
    """Forward pass. `state` is (batch, input_dim) f32; returns (batch, n_actions) f32."""
    w1, b1, w2, b2, w3, b3 = params
    batch, input_dim = state.shape
    d1, d2 = w1.shape[1], w2.shape[1]   # lane-padded hidden dims
    n_actions = w3.shape[1]             # NOT lane-padded

    # Batch tile: multiple of the bf16 sublane pack, capped at block_batch.
    # For batches > one sublane pack, target >= 2 grid steps so v7x can shard
    # tiles across its two TensorCores (neutral on single-TC v5e/v6e).
    if batch > SUBLANE:
        tb = min(block_batch, _round_up(pl.cdiv(batch, 2), SUBLANE))
    else:
        tb = min(block_batch, _round_up(batch, SUBLANE))
    grid = (pl.cdiv(batch, tb),)   # ragged last tile handled by Pallas (no jnp.pad)

    flops = 2 * batch * (input_dim * d1 + d1 * d2 + d2 * n_actions)
    bytes_accessed = (
        state.size * state.dtype.itemsize
        + sum(int(p.size) * p.dtype.itemsize for p in params)
        + batch * n_actions * 4
    )

    return pl.pallas_call(
        dqn_kernel,
        out_shape=jax.ShapeDtypeStruct((batch, n_actions), jnp.float32),
        grid_spec=pltpu.PrefetchScalarGridSpec(
            num_scalar_prefetch=0,
            grid=grid,
            in_specs=[
                # Batch-tiled activation input (f32, narrow feature dim left as-is).
                pl.BlockSpec((tb, input_dim), lambda i: (i, 0)),
                # Weights / biases: constant index_map -> fetched once, VMEM-resident.
                pl.BlockSpec(w1.shape, lambda i: (0, 0)),
                pl.BlockSpec(b1.shape, lambda i: (0, 0)),
                pl.BlockSpec(w2.shape, lambda i: (0, 0)),
                pl.BlockSpec(b2.shape, lambda i: (0, 0)),
                pl.BlockSpec(w3.shape, lambda i: (0, 0)),
                pl.BlockSpec(b3.shape, lambda i: (0, 0)),
            ],
            # Narrow output block: last dim == full array dim (legal), tiny HBM writeback.
            out_specs=pl.BlockSpec((tb, n_actions), lambda i: (i, 0)),
        ),
        compiler_params=pltpu.CompilerParams(
            dimension_semantics=("parallel",),       # shard batch tiles across TCs on v7x
            vmem_limit_bytes=32 * 1024 * 1024,       # plenty of headroom on v5e/v6e/v7x
        ),
        cost_estimate=pl.CostEstimate(
            flops=flops, transcendentals=0, bytes_accessed=bytes_accessed
        ),
    )(state, w1, b1, w2, b2, w3, b3)


def init_linear(key, fan_in, fan_out, out_padded=None):
    """torch.nn.Linear default init (U(-k, k), k = 1/sqrt(fan_in)).

    Returns weight of shape (fan_in, out) (transposed vs. PyTorch) and bias (1, out).
    If out_padded is given, the output dim is zero-padded (padded columns stay 0).
    """
    kw, kb = jax.random.split(key)
    bound = 1.0 / math.sqrt(fan_in)
    w = jax.random.uniform(kw, (fan_in, fan_out), jnp.float32, -bound, bound)
    b = jax.random.uniform(kb, (1, fan_out), jnp.float32, -bound, bound)
    if out_padded is not None and out_padded > fan_out:
        w = jnp.pad(w, ((0, 0), (0, out_padded - fan_out)))
        b = jnp.pad(b, ((0, 0), (0, out_padded - fan_out)))
    return w, b


def make_dqn_params(key, input_dim, fc1_dims, fc2_dims, n_actions):
    """Build persistent parameters: bf16 weights, f32 biases.

    Hidden dims are lane-padded to 128 (zero columns); the fc3 output dim is
    left at n_actions so the kernel writes a narrow output slab.
    """
    d1 = _round_up(fc1_dims, LANE)
    d2 = _round_up(fc2_dims, LANE)

    k1, k2, k3 = jax.random.split(key, 3)
    w1, b1 = init_linear(k1, input_dim, fc1_dims, d1)
    w2, b2 = init_linear(k2, fc1_dims, fc2_dims, d2)
    w3, b3 = init_linear(k3, fc2_dims, n_actions, None)   # keep output narrow

    # Zero-pad the contraction dims of fc2/fc3: padded hidden columns are exactly
    # 0 after the padded-fc output + ReLU, so they contribute nothing.
    w2 = jnp.pad(w2, ((0, d1 - fc1_dims), (0, 0)))
    w3 = jnp.pad(w3, ((0, d2 - fc2_dims), (0, 0)))

    return (
        w1.astype(jnp.bfloat16), b1,
        w2.astype(jnp.bfloat16), b2,
        w3.astype(jnp.bfloat16), b3,
    )


def dqn_reference(state, params):
    """Pure-JAX f32 reference using the same (bf16-rounded, padded) parameters.

    Note: the kernel quantizes the f32 state to bf16 on-chip, so a loose
    tolerance is used when comparing (acceptable for DQN Q-values).
    """
    w1, b1, w2, b2, w3, b3 = params
    x = state.astype(jnp.float32)
    h1 = jnp.maximum(x @ w1.astype(jnp.float32) + b1, 0.0)
    h2 = jnp.maximum(h1 @ w2.astype(jnp.float32) + b2, 0.0)
    return h2 @ w3.astype(jnp.float32) + b3


if __name__ == "__main__":
    # Small shapes consistent with DeepQNetwork(lr, input_dims=(8,), 32, 32, 4)
    batch = 4
    input_dim = 8
    fc1_dims = 32
    fc2_dims = 32
    n_actions = 4

    key = jax.random.PRNGKey(0)
    key_params, key_state = jax.random.split(key)

    params = make_dqn_params(key_params, input_dim, fc1_dims, fc2_dims, n_actions)
    state = jax.random.normal(key_state, (batch, input_dim), jnp.float32)

    actions = dqn_forward(state, params)
    actions = jax.block_until_ready(actions)

    expected = dqn_reference(state, params)
    assert actions.shape == (batch, n_actions), actions.shape
    assert jnp.allclose(actions, expected, atol=2e-2, rtol=2e-2), (
        jnp.max(jnp.abs(actions - expected))
    )

    # TODO(synk): optimizer (Adam), MSELoss and device placement from the PyTorch
    # module are training-loop machinery, not part of forward(); not translated.
    print("KERNEL_OK")
</pallas_src>

<mosaic_0001>
module attributes {stable_mosaic.version = 11 : i64} {
  func.func @dqn_kernel(%arg0: i32, %arg1: memref<16x8xf32, #tpu.memory_space<vmem>>, %arg2: memref<8x128xbf16, #tpu.memory_space<vmem>>, %arg3: memref<1x128xf32, #tpu.memory_space<vmem>>, %arg4: memref<128x128xbf16, #tpu.memory_space<vmem>>, %arg5: memref<1x128xf32, #tpu.memory_space<vmem>>, %arg6: memref<128x4xbf16, #tpu.memory_space<vmem>>, %arg7: memref<1x4xf32, #tpu.memory_space<vmem>>, %arg8: memref<16x4xf32, #tpu.memory_space<vmem>>) attributes {dimension_semantics = [#tpu.dimension_semantics<parallel>], iteration_bounds = array<i64: 1>, scalar_prefetch = 0 : i64, scratch_operands = 0 : i64, tpu.core_type = #tpu.core_type<tc>, window_params = [{transform_indices = @transform_0, window_bounds = array<i64: 16, 8>}, {pipeline_mode = #tpu.pipeline_mode<synchronous>, transform_indices = @transform_1, window_bounds = array<i64: 8, 128>}, {pipeline_mode = #tpu.pipeline_mode<synchronous>, transform_indices = @transform_2, window_bounds = array<i64: 1, 128>}, {pipeline_mode = #tpu.pipeline_mode<synchronous>, transform_indices = @transform_3, window_bounds = array<i64: 128, 128>}, {pipeline_mode = #tpu.pipeline_mode<synchronous>, transform_indices = @transform_4, window_bounds = array<i64: 1, 128>}, {pipeline_mode = #tpu.pipeline_mode<synchronous>, transform_indices = @transform_5, window_bounds = array<i64: 128, 4>}, {pipeline_mode = #tpu.pipeline_mode<synchronous>, transform_indices = @transform_6, window_bounds = array<i64: 1, 4>}, {transform_indices = @transform_7, window_bounds = array<i64: 16, 4>}]} {
    %c0 = arith.constant 0 : index
    %c0_0 = arith.constant 0 : index
    %0 = vector.load %arg1[%c0, %c0_0] : memref<16x8xf32, #tpu.memory_space<vmem>>, vector<16x8xf32>
    %1 = arith.truncf %0 : vector<16x8xf32> to vector<16x8xbf16>
    %c0_1 = arith.constant 0 : index
    %c0_2 = arith.constant 0 : index
    %2 = vector.load %arg2[%c0_1, %c0_2] : memref<8x128xbf16, #tpu.memory_space<vmem>>, vector<8x128xbf16>
    %cst = arith.constant dense<0.000000e+00> : vector<16x128xf32>
    %3 = tpu.matmul %1, %2, %cst {dimension_numbers = #tpu.dot_dimension_numbers<[1], [0], [0], [1], [0, 0, 1, 1], [], []>} : vector<16x8xbf16>, vector<8x128xbf16>, vector<16x128xf32> -> vector<16x128xf32>
    %c0_3 = arith.constant 0 : index
    %c0_4 = arith.constant 0 : index
    %4 = vector.load %arg3[%c0_3, %c0_4] : memref<1x128xf32, #tpu.memory_space<vmem>>, vector<1x128xf32>
    %5 = vector.broadcast %4 : vector<1x128xf32> to vector<16x128xf32>
    %6 = arith.addf %3, %5 : vector<16x128xf32>
    %cst_5 = arith.constant 0.000000e+00 : f32
    %7 = vector.broadcast %cst_5 : f32 to vector<16x128xf32>
    %8 = arith.maximumf %6, %7 : vector<16x128xf32>
    %9 = arith.truncf %8 : vector<16x128xf32> to vector<16x128xbf16>
    %c0_6 = arith.constant 0 : index
    %c0_7 = arith.constant 0 : index
    %10 = vector.load %arg4[%c0_6, %c0_7] : memref<128x128xbf16, #tpu.memory_space<vmem>>, vector<128x128xbf16>
    %cst_8 = arith.constant dense<0.000000e+00> : vector<16x128xf32>
    %11 = tpu.matmul %9, %10, %cst_8 {dimension_numbers = #tpu.dot_dimension_numbers<[1], [0], [0], [1], [0, 0, 1, 1], [], []>} : vector<16x128xbf16>, vector<128x128xbf16>, vector<16x128xf32> -> vector<16x128xf32>
    %c0_9 = arith.constant 0 : index
    %c0_10 = arith.constant 0 : index
    %12 = vector.load %arg5[%c0_9, %c0_10] : memref<1x128xf32, #tpu.memory_space<vmem>>, vector<1x128xf32>
    %13 = vector.broadcast %12 : vector<1x128xf32> to vector<16x128xf32>
    %14 = arith.addf %11, %13 : vector<16x128xf32>
    %cst_11 = arith.constant 0.000000e+00 : f32
    %15 = vector.broadcast %cst_11 : f32 to vector<16x128xf32>
    %16 = arith.maximumf %14, %15 : vector<16x128xf32>
    %17 = arith.truncf %16 : vector<16x128xf32> to vector<16x128xbf16>
    %c0_12 = arith.constant 0 : index
    %c0_13 = arith.constant 0 : index
    %18 = vector.load %arg6[%c0_12, %c0_13] : memref<128x4xbf16, #tpu.memory_space<vmem>>, vector<128x4xbf16>
    %cst_14 = arith.constant dense<0.000000e+00> : vector<16x4xf32>
    %19 = tpu.matmul %17, %18, %cst_14 {dimension_numbers = #tpu.dot_dimension_numbers<[1], [0], [0], [1], [0, 0, 1, 1], [], []>} : vector<16x128xbf16>, vector<128x4xbf16>, vector<16x4xf32> -> vector<16x4xf32>
    %c0_15 = arith.constant 0 : index
    %c0_16 = arith.constant 0 : index
    %20 = vector.load %arg7[%c0_15, %c0_16] : memref<1x4xf32, #tpu.memory_space<vmem>>, vector<1x4xf32>
    %21 = vector.broadcast %20 : vector<1x4xf32> to vector<16x4xf32>
    %22 = arith.addf %19, %21 : vector<16x4xf32>
    %c0_17 = arith.constant 0 : index
    %c0_18 = arith.constant 0 : index
    %23 = vector.load %arg8[%c0_17, %c0_18] : memref<16x4xf32, #tpu.memory_space<vmem>>, vector<16x4xf32>
    tpu.vector_store %arg8[%c0_17, %c0_18], %22 {strides = array<i32>} : memref<16x4xf32, #tpu.memory_space<vmem>>, vector<16x4xf32>,
    return
  }
  func.func @transform_0(%arg0: i32) -> (i32, i32) {
    %c0_i32 = arith.constant 0 : i32
    %c0_i32_0 = arith.constant 0 : i32
    return %arg0, %c0_i32 : i32, i32
  }
  func.func @transform_1(%arg0: i32) -> (i32, i32) {
    %c0_i32 = arith.constant 0 : i32
    %c0_i32_0 = arith.constant 0 : i32
    %c0_i32_1 = arith.constant 0 : i32
    return %c0_i32, %c0_i32_0 : i32, i32
  }
  func.func @transform_2(%arg0: i32) -> (i32, i32) {
    %c0_i32 = arith.constant 0 : i32
    %c0_i32_0 = arith.constant 0 : i32
    %c0_i32_1 = arith.constant 0 : i32
    return %c0_i32, %c0_i32_0 : i32, i32
  }
  func.func @transform_3(%arg0: i32) -> (i32, i32) {
    %c0_i32 = arith.constant 0 : i32
    %c0_i32_0 = arith.constant 0 : i32
    %c0_i32_1 = arith.constant 0 : i32
    return %c0_i32, %c0_i32_0 : i32, i32
  }
  func.func @transform_4(%arg0: i32) -> (i32, i32) {
    %c0_i32 = arith.constant 0 : i32
    %c0_i32_0 = arith.constant 0 : i32
    %c0_i32_1 = arith.constant 0 : i32
    return %c0_i32, %c0_i32_0 : i32, i32
  }
  func.func @transform_5(%arg0: i32) -> (i32, i32) {
    %c0_i32 = arith.constant 0 : i32
    %c0_i32_0 = arith.constant 0 : i32
    %c0_i32_1 = arith.constant 0 : i32
    return %c0_i32, %c0_i32_0 : i32, i32
  }
  func.func @transform_6(%arg0: i32) -> (i32, i32) {
    %c0_i32 = arith.constant 0 : i32
    %c0_i32_0 = arith.constant 0 : i32
    %c0_i32_1 = arith.constant 0 : i32
    return %c0_i32, %c0_i32_0 : i32, i32
  }
  func.func @transform_7(%arg0: i32) -> (i32, i32) {
    %c0_i32 = arith.constant 0 : i32
    %c0_i32_0 = arith.constant 0 : i32
    return %arg0, %c0_i32 : i32, i32
  }
}

</mosaic_0001>

<bundles_post_ra>
// kernel: tpu_custom_call.1
= control target key start
LH: loop header
LB: loop body
LE: loop exit
PB: predicated region body
PF: predicated region fallthrough
CT: control target
= control target key end

     0   :  { %12 = vsyncpa [#allocation3], 0  ;;  %s640_s0 = inlined_call_operand.vmem [shape: f32[4,8], index: 0, kind: input, shape index: {}]   ;;  %s641_s1 = inlined_call_operand.hbm [shape: bf16[8,128], index: 1, kind: input, shape index: {}]   ;;  %s642_s2 = inlined_call_operand.vmem [shape: f32[1,128], index: 2, kind: input, shape index: {}]   ;;  %s643_s3 = inlined_call_operand.vmem [shape: bf16[128,128], index: 3, kind: input, shape index: {}]   ;;  %s644_s4 = inlined_call_operand.vmem [shape: f32[1,128], index: 4, kind: input, shape index: {}]   ;;  %s645_s5 = inlined_call_operand.vmem [shape: bf16[128,4], index: 5, kind: input, shape index: {}]   ;;  %s646_s6 = inlined_call_operand.vmem [shape: f32[1,4], index: 6, kind: input, shape index: {}]   ;;  %s647_s7 = inlined_call_operand.hbm [shape: f32[4,4], index: 7, kind: output, shape index: {}]  }
   0x1   :  { %13 = vsyncpa [#allocation4], 0  ;;  %s502_s24 = smov [#allocation2]  }
   0x2   :  { %s22_s25 = sshll.u32 %s502_s24, 4  ;;  %s23_s25 = int_to_ptr.vmem [resolvable:$true] %s22_s25 }
   0x3   :  { %s466_s26 = scalar_lea.vmem %s23_s25, 64  ;;  %p471_p1 = scmp.lt.s32.totalorder %s23_s25, %s23_s25 }
   0x4   :  { %p467_p0 = scmp.ne.s32.totalorder %s23_s25, %s466_s26  ;;  %p472_p2 = scmp.lt.s32.totalorder %s466_s26, %s466_s26 }
   0x6   :  { %p473_p3 = por %p472_p2, %p471_p1 }
   0x8   :  { %p474_p4 = pnand %p473_p3, %p467_p0 }
   0xa   :  { %477 = shalt.err (!%p474_p4)
}
   0xb   :  { %25 = dma.hbm_to_vmem [thread:$0]  %s641_s1, 64, %s23_s25, [#allocation3]  }
   0xc   :  { %498 = dma.done.wait [#allocation3], 64  }
   0xd   :  { %499 = vsyncadd [#allocation3], 4294967232  ;;  %v503_v0 = vmov 0.0   ;;  %vm504_vm0 = vmmov 0   ;;  %vm55_vm1 = vcmask 1043456   ;;  %v40_v2 = vld [vmem:[%s640_s0] sm:$0xff] }
   0xe   :  { %390 = vmatprep.subr.bf16.mxu0 %v503_v0  ;;  %392 = vmatprep.mubr.msk.bf16.mxu0 %vm504_vm0, %v503_v0  ;;  %v43_v1 = vld [vmem:[#allocation2] sm:$0xf]  ;;  %v41_v3 = vld [vmem:[%s640_s0 + $0x8] sm:$0xff]  ;;  %v442_v6 = vld [vmem:[%s643_s3 + $0x38] sm:$0xff]   ;;  %vm51_vm2 = vcmask 64512   ;;  %vm330_vm3 = vcmask 31744  }
   0xf   :  { %396 = vmatprep.subr.bf16.mxu1 %v503_v0  ;;  %412 = vmatprep.mubr.msk.bf16.mxu1 %vm504_vm0, %v503_v0  ;;  %v57_v4 = vsel %vm55_vm1, %v43_v1, 0  ;;  %v42_v5 = vpack.c.bf16 %v41_v3, %v40_v2  ;;  %v443_v7 = vld [vmem:[%s643_s3 + $0x30] sm:$0xff]   ;;  %v444_v8 = vld [vmem:[%s643_s3 + $0x28] sm:$0xff]   ;;  %v445_v9 = vld [vmem:[%s643_s3 + $0x20] sm:$0xff]  }
  0x10   :  { %391 = vmatpush3.bf16.msra.mxu0 %v57_v4  ;;  %397 = vmatpush3.bf16.msra.mxu1 %v442_v6  ;;  %v446_v10 = vld [vmem:[%s643_s3 + $0x18] sm:$0xff]   ;;  %v447_v11 = vld [vmem:[%s643_s3 + $0x10] sm:$0xff]   ;;  %v448_v12 = vld [vmem:[%s643_s3 + $0x8] sm:$0xff]  }
  0x11   :  { %416 = vmatprep.subr.bf16.mxu0 %v503_v0  ;;  %398 = vmatprep.subr.bf16.mxu1 %v503_v0  ;;  %v449_v13 = vld [vmem:[%s643_s3] sm:$0xff]   ;;  %v450_v14 = vld [vmem:[%s645_s5 + $0x38] sm:$0xff]   ;;  %v451_v15 = vld [vmem:[%s645_s5 + $0x30] sm:$0xff]  }
  0x12   :  { %v452_v16 = vld [vmem:[%s645_s5 + $0x28] sm:$0xff]   ;;  %v453_v17 = vld [vmem:[%s645_s5 + $0x20] sm:$0xff]   ;;  %v454_v18 = vld [vmem:[%s645_s5 + $0x18] sm:$0xff]  }
  0x13   :  { %393 = vmatmul.mubr.msk.bf16.vlgmr.msra.gmra.mxu0 %vm51_vm2, %v42_v5  ;;  %v350_v19 = vld [vmem:[%s642_s2] ss:$0 sm:$0xff]  ;;  %v455_v29 = vld [vmem:[%s645_s5 + $0x10] sm:$0xff]   ;;  %v456_v30 = vld [vmem:[%s645_s5 + $0x8] sm:$0xff]  }
  0x14   :  { %432 = vmatprep.mubr.msk.bf16.mxu0 %vm504_vm0, %v503_v0  ;;  %399 = vmatpush3.bf16.msra.mxu1 %v443_v7  ;;  %v457_v31 = vld [vmem:[%s645_s5] sm:$0xff]  }
  0x15   :  { %400 = vmatprep.subr.bf16.mxu1 %v503_v0  ;;  %417 = vmatpush3.bf16.msra.mxu0 %v450_v14  ;;  %v352_v32 = vld [vmem:[%s644_s4] ss:$0 sm:$0xff] }
  0x16   :  { %418 = vmatprep.subr.bf16.mxu0 %v503_v0  ;;  %v361_v42 = vld [vmem:[%s646_s6] ss:$0 sm:$0xff] }
  0x18   :  { %401 = vmatpush3.bf16.msra.mxu1 %v444_v8 }
  0x19   :  { %402 = vmatprep.subr.bf16.mxu1 %v503_v0  ;;  %419 = vmatpush3.bf16.msra.mxu0 %v451_v15 }
  0x1a   :  { %420 = vmatprep.subr.bf16.mxu0 %v503_v0 }
  0x1c   :  { %403 = vmatpush3.bf16.msra.mxu1 %v445_v9 }
  0x1d   :  { %404 = vmatprep.subr.bf16.mxu1 %v503_v0  ;;  %421 = vmatpush3.bf16.msra.mxu0 %v452_v16 }
  0x1e   :  { %422 = vmatprep.subr.bf16.mxu0 %v503_v0 }
  0x20   :  { %405 = vmatpush3.bf16.msra.mxu1 %v446_v10 }
  0x21   :  { %406 = vmatprep.subr.bf16.mxu1 %v503_v0  ;;  %423 = vmatpush3.bf16.msra.mxu0 %v453_v17 }
  0x22   :  { %424 = vmatprep.subr.bf16.mxu0 %v503_v0 }
  0x24   :  { %407 = vmatpush3.bf16.msra.mxu1 %v447_v11 }
  0x25   :  { %408 = vmatprep.subr.bf16.mxu1 %v503_v0  ;;  %425 = vmatpush3.bf16.msra.mxu0 %v454_v18 }
  0x26   :  { %426 = vmatprep.subr.bf16.mxu0 %v503_v0 }
  0x28   :  { %409 = vmatpush3.bf16.msra.mxu1 %v448_v12 }
  0x29   :  { %410 = vmatprep.subr.bf16.mxu1 %v503_v0  ;;  %427 = vmatpush3.bf16.msra.mxu0 %v455_v29 }
  0x2a   :  { %428 = vmatprep.subr.bf16.mxu0 %v503_v0 }
  0x2c   :  { %411 = vmatpush3.bf16.msra.mxu1 %v449_v13 }
  0x2d   :  { %429 = vmatpush3.bf16.msra.mxu0 %v456_v30 }
  0x2e   :  { %430 = vmatprep.subr.bf16.mxu0 %v503_v0 }
  0x31   :  { %431 = vmatpush3.bf16.msra.mxu0 %v457_v31 }
  0xd3   :  { %v93_v20 = vpop.f32.mrf.mxu0 }
  0xd4   :  { %v94_v22 = vadd.f32 %v350_v19, %v93_v20 }
  0xd5   :  { %v394_v21 = vpop.f32.mrf.mxu0 }
  0xd6   :  { %v100_v26 = vmax.f32 %v94_v22, 0.0 }
  0xd7   :  { %v96_v23 = vpop.f32.mrf.mxu0 }
  0xd8   :  { %v97_v24 = vadd.f32 %v350_v19, %v96_v23 }
  0xd9   :  { %v395_v25 = vpop.f32.mrf.mxu0 }
  0xda   :  { %v101_v27 = vmax.f32 %v97_v24, 0.0 }
  0xdc   :  { %v102_v28 = vpack.c.bf16 %v101_v27, %v100_v26 }
  0xde   :  { %413 = vmatmul.mubr.bf16.vlgmr.msra.gmra.mxu1 %v102_v28 }
 0x19e   :  { %v208_v33 = vpop.f32.mrf.mxu1 }
 0x19f   :  { %v209_v35 = vadd.f32 %v352_v32, %v208_v33 }
 0x1a0   :  { %v414_v34 = vpop.f32.mrf.mxu1 }
 0x1a1   :  { %v215_v39 = vmax.f32 %v209_v35, 0.0 }
 0x1a2   :  { %v211_v36 = vpop.f32.mrf.mxu1 }
 0x1a3   :  { %v212_v37 = vadd.f32 %v352_v32, %v211_v36 }
 0x1a4   :  { %v415_v38 = vpop.f32.mrf.mxu1 }
 0x1a5   :  { %v216_v40 = vmax.f32 %v212_v37, 0.0 }
 0x1a7   :  { %v217_v41 = vpack.c.bf16 %v216_v40, %v215_v39 }
 0x1a9   :  { %433 = vmatmul.mubr.bf16.vlgmr.msra.gmra.mxu0 %v217_v41 }
 0x269   :  { %v323_v43 = vpop.f32.mrf.mxu0 }
 0x26a   :  { %v324_v44 = vadd.f32 %v361_v42, %v323_v43 }
 0x26b   :  { %v434_v45 = vpop.f32.mrf.mxu0 }
 0x26c   :  { %331 = vst.msk [vmem:[#allocation5] sm:$0xff] %vm330_vm3, %v324_v44 }
 0x26d   :  { %v326_v46 = vpop.f32.mrf.mxu0 }
 0x26e   :  { %v327_v47 = vadd.f32 %v361_v42, %v326_v46 }
 0x26f   :  { %v435_v48 = vpop.f32.mrf.mxu0 }
 0x270   :  { %332 = vst.msk [vmem:[#allocation5 + $0x8] sm:$0xff] %vm330_vm3, %v327_v47 }
 0x271   :  { %337 = vsyncadd [#allocation4], 192  ;;  %s505_s4 = smov [#allocation5]  }
 0x272   :  { %s338_s5 = sshll.u32 %s505_s4, 4  ;;  %s339_s5 = int_to_ptr.vmem [resolvable:$true] %s338_s5 }
 0x273   :  { %s478_s19 = scalar_lea.vmem %s339_s5, 64  ;;  %s482_s20 = scalar_lea.vmem %s339_s5, 256 }
 0x274   :  { %p479_p5 = scmp.ne.s32.totalorder %s339_s5, %s478_s19  ;;  %p483_p6 = scmp.lt.s32.totalorder %s339_s5, %s339_s5 }
 0x275   :  { %p484_p7 = scmp.lt.s32.totalorder %s482_s20, %s478_s19 }
 0x277   :  { %p485_p8 = por %p484_p7, %p483_p6 }
 0x279   :  { %p486_p9 = pnand %p485_p8, %p479_p5 }
 0x27b   :  { %489 = shalt.err (!%p486_p9)
}
 0x27c   :  { %s506_s6 = smov 64   ;;  %s507_s21 = smov 4  }
 0x27d   :  { %344 = dma.vmem_to_hbm [thread:$0]  %s339_s5, 64, %s647_s7, [#allocation4], %s506_s6, %s506_s6, %s507_s21  }
 0x27e   :  { %500 = dma.done.wait [#allocation4], 256  }
 0x27f   :  { %501 = vsyncadd [#allocation4], 4294967040 }
 0x280   :  { %348 = vsyncpa [#allocation3], 1 }
 0x281   :  { %349 = vsyncpa [#allocation4], 1 }

</bundles_post_ra>
